<compile_context>
chip_gen: v5e
topology: v5e:2x2
jax: 0.10.0
libtpu: 0.0.40
codegen_flags: <defaults>
</compile_context>

<pallas_src>
import jax
import jax.numpy as jnp
from jax.experimental import pallas as pl
from jax.experimental.pallas import tpu as pltpu


# ---------------------------------------------------------------------------
# Kernels
# ---------------------------------------------------------------------------
def _channel_linear_kernel(x_ref, w_ref, b_ref, o_ref):
    # x_ref: (BB, C_in, TS), w_ref: (TC_out, C_in), b_ref: (TC_out, 1) f32,
    # o_ref: (BB, TC_out, TS)
    w = w_ref[...]
    b = b_ref[...]
    for bb in range(x_ref.shape[0]):          # static unroll over batch block
        acc = jnp.dot(w, x_ref[bb], preferred_element_type=jnp.float32)
        o_ref[bb] = (acc + b).astype(o_ref.dtype)


def _rows_linear_kernel(x_ref, wt_ref, b_ref, o_ref):
    # x_ref: (TM, C_in), wt_ref: (C_in, C_out), b_ref: (1, C_out) f32,
    # o_ref: (TM, C_out)
    acc = jnp.dot(x_ref[...], wt_ref[...], preferred_element_type=jnp.float32)
    o_ref[...] = (acc + b_ref[...]).astype(o_ref.dtype)


# ---------------------------------------------------------------------------
# Tiling / VMEM heuristics
# ---------------------------------------------------------------------------
def _vmem_budget_bytes() -> int:
    """~75% of the per-TensorCore VMEM capacity (generation aware)."""
    try:
        cap = int(pltpu.get_tpu_info().vmem_capacity_bytes)
    except Exception:
        cap = 64 << 20                      # conservative default: v7x per-TC
    return (3 * cap) // 4                   # headroom for Mosaic internals


def _pick_cout_tile(C_out, C_in, itemsize, budget):
    """Keep the whole weight resident if it fits comfortably (double-buffered
    worst case); otherwise tile C_out in MXU-friendly multiples of 256."""
    if C_out <= 256 or 2 * C_out * C_in * itemsize <= budget // 2:
        return C_out
    rows = (budget // 4) // max(2 * C_in * itemsize, 1)
    rows = max(256, (rows // 256) * 256)
    return min(C_out, rows)


def _pick_spatial_tile(S, C_in, TC_out, itemsize, tile_budget):
    """Lane-dim tile: full S if it fits, else a 128-multiple up to 2048 lanes
    derived from the VMEM budget (double-buffered x + out tiles)."""
    per_lane = 2 * (C_in + TC_out) * itemsize
    ts_cap = min(2048, max(128, tile_budget // max(per_lane, 1)))
    if S <= ts_cap:
        return S                             # full spatial extent (always legal)
    return max(128, (ts_cap // 128) * 128)   # ragged last tile is masked


def _pick_batch_block(B, S, TS, C_in, TC_out, itemsize, tile_budget):
    """Block several batches per grid step when one tile already spans S."""
    if TS != S or B <= 1:
        return 1
    per_batch = 2 * TS * (C_in + TC_out) * itemsize
    return int(min(B, 8, max(1, tile_budget // max(per_batch, 1))))


# ---------------------------------------------------------------------------
# Wrappers
# ---------------------------------------------------------------------------
def _native_channel_linear(x, weight, bias_f32, budget):
    B, C_in, S = x.shape
    C_out = weight.shape[0]
    itemsize = jnp.dtype(x.dtype).itemsize

    TC_out = _pick_cout_tile(C_out, C_in, itemsize, budget)
    n_co = pl.cdiv(C_out, TC_out)

    # Resident weight/bias accounting (double-buffered worst case) + slack.
    resident = 2 * TC_out * C_in * itemsize + 2 * TC_out * 4
    slack = 4 << 20
    tile_budget = max(1 << 20, budget - resident - slack)

    TS = _pick_spatial_tile(S, C_in, TC_out, itemsize, tile_budget)
    BB = _pick_batch_block(B, S, TS, C_in, TC_out, itemsize, tile_budget)
    n_b = pl.cdiv(B, BB)
    n_s = pl.cdiv(S, TS)

    per_step = 2 * BB * TS * (C_in + TC_out) * itemsize
    vmem_limit = int(min(budget, max(32 << 20, per_step + resident + slack)))

    cost = pl.CostEstimate(
        flops=2 * B * S * C_in * C_out,
        transcendentals=0,
        bytes_accessed=itemsize * (n_co * B * S * C_in + B * S * C_out
                                   + C_out * C_in) + 4 * C_out,
    )

    bias_2d = bias_f32.reshape(C_out, 1)
    out_shape = jax.ShapeDtypeStruct((B, C_out, S), x.dtype)

    def build(single_buffer_resident):
        res_kwargs = ({"pipeline_mode": pl.Buffered(1)}
                      if single_buffer_resident else {})
        return pl.pallas_call(
            _channel_linear_kernel,
            out_shape=out_shape,
            grid_spec=pltpu.PrefetchScalarGridSpec(
                num_scalar_prefetch=0,
                grid=(n_b, n_co, n_s),
                in_specs=[
                    pl.BlockSpec((BB, C_in, TS), lambda b, co, s: (b, 0, s)),
                    pl.BlockSpec((TC_out, C_in), lambda b, co, s: (co, 0),
                                 **res_kwargs),
                    pl.BlockSpec((TC_out, 1), lambda b, co, s: (co, 0),
                                 **res_kwargs),
                ],
                out_specs=pl.BlockSpec((BB, TC_out, TS),
                                       lambda b, co, s: (b, co, s)),
            ),
            compiler_params=pltpu.CompilerParams(
                dimension_semantics=("parallel", "parallel", "parallel"),
                vmem_limit_bytes=vmem_limit,
            ),
            cost_estimate=cost,
        )

    # Single-buffer the weight/bias only when they are truly grid-invariant
    # (n_co == 1); fall back to default double buffering if this jax/mosaic
    # version rejects pl.Buffered(1).  Correctness is identical either way.
    if n_co == 1:
        try:
            return build(True)(x, weight, bias_2d)
        except Exception:
            pass
    return build(False)(x, weight, bias_2d)


def _small_s_channel_linear(x, weight, bias_f32, budget):
    # S < 128: the native layout would make every output store a masked
    # (<128-lane) partial store, so use the transposed GEMM formulation
    # (lane axis = C_out), accepting one permute pair in plain XLA.
    B, C_in, S = x.shape
    C_out = weight.shape[0]
    itemsize = jnp.dtype(x.dtype).itemsize
    M = B * S

    x2 = jnp.transpose(x, (0, 2, 1)).reshape(M, C_in)
    wt = jnp.transpose(weight)                 # (C_in, C_out)
    b2 = bias_f32.reshape(1, C_out)

    per_row = 2 * (C_in + C_out) * itemsize
    tm_cap = min(1024, max(8, (budget // 2) // max(per_row, 1)))
    TM = M if M <= tm_cap else max(8, (tm_cap // 8) * 8)
    n_m = pl.cdiv(M, TM)

    vmem_limit = int(min(budget, max(
        32 << 20,
        2 * TM * (C_in + C_out) * itemsize
        + 2 * (C_in * C_out * itemsize + C_out * 4) + (4 << 20))))

    y2 = pl.pallas_call(
        _rows_linear_kernel,
        out_shape=jax.ShapeDtypeStruct((M, C_out), x.dtype),
        grid_spec=pltpu.PrefetchScalarGridSpec(
            num_scalar_prefetch=0,
            grid=(n_m,),
            in_specs=[
                pl.BlockSpec((TM, C_in), lambda m: (m, 0)),
                pl.BlockSpec((C_in, C_out), lambda m: (0, 0)),
                pl.BlockSpec((1, C_out), lambda m: (0, 0)),
            ],
            out_specs=pl.BlockSpec((TM, C_out), lambda m: (m, 0)),
        ),
        compiler_params=pltpu.CompilerParams(
            dimension_semantics=("parallel",),
            vmem_limit_bytes=vmem_limit,
        ),
    )(x2, wt, b2)

    return jnp.transpose(y2.reshape(B, S, C_out), (0, 2, 1))


def channel_linear(x, weight, bias):
    """x: (B, C_in, S); weight: (C_out, C_in); bias: (C_out,) -> (B, C_out, S)."""
    B, C_in, S = x.shape
    C_out, c_in_w = weight.shape
    assert c_in_w == C_in, "weight / input channel mismatch"
    # Best MXU / layout efficiency when C_in, C_out are multiples of the
    # sublane tile (8 f32 / 16 bf16); the kernel stays correct (and is
    # DMA-bound anyway) for other values, so no padding is done here.
    weight = weight.astype(x.dtype)
    bias_f32 = bias.astype(jnp.float32)
    budget = _vmem_budget_bytes()
    if S < 128:
        return _small_s_channel_linear(x, weight, bias_f32, budget)
    return _native_channel_linear(x, weight, bias_f32, budget)


# ---------------------------------------------------------------------------
# Self-test
# ---------------------------------------------------------------------------
if __name__ == "__main__":
    key = jax.random.PRNGKey(0)

    def reference(x, w, b):
        return jnp.einsum("bcs,oc->bos", x, w) + b[None, :, None]

    def make_inputs(key, B, C_in, C_out, S, dtype):
        kx, kw, kb = jax.random.split(key, 3)
        bound = 1.0 / (C_in ** 0.5)
        x = jax.random.normal(kx, (B, C_in, S), dtype=jnp.float32).astype(dtype)
        w = jax.random.uniform(kw, (C_out, C_in), jnp.float32,
                               -bound, bound).astype(dtype)
        b = jax.random.uniform(kb, (C_out,), jnp.float32, -bound, bound)
        return x, w, b

    # 1) Small module-like shape (exercises the small-S transposed fallback).
    x, w, b = make_inputs(key, 2, 4, 8, 16, jnp.float32)
    y = jax.block_until_ready(channel_linear(x, w, b))
    assert y.shape == (2, 8, 16)
    assert jnp.allclose(y, reference(x, w, b), atol=1e-5)

    # 2) Ragged spatial tiling (S not a multiple of the spatial tile).
    x, w, b = make_inputs(key, 2, 8, 16, 2304, jnp.float32)
    y = jax.block_until_ready(channel_linear(x, w, b))
    assert y.shape == (2, 16, 2304)
    assert jnp.allclose(y, reference(x, w, b), atol=1e-4)

    # 3) bf16 I/O with a batch-blocked single spatial tile.
    x, w, b = make_inputs(key, 2, 16, 16, 256, jnp.bfloat16)
    y = jax.block_until_ready(channel_linear(x, w, b))
    assert y.shape == (2, 16, 256) and y.dtype == jnp.bfloat16
    y_ref = reference(x.astype(jnp.float32), w.astype(jnp.float32), b)
    assert jnp.allclose(y.astype(jnp.float32), y_ref, atol=5e-2, rtol=5e-2)

    print("KERNEL_OK")
</pallas_src>

<mosaic_0001>
module attributes {stable_mosaic.version = 11 : i64} {
  func.func @_rows_linear_kernel(%arg0: i32, %arg1: memref<32x4xf32, #tpu.memory_space<vmem>>, %arg2: memref<4x8xf32, #tpu.memory_space<vmem>>, %arg3: memref<1x8xf32, #tpu.memory_space<vmem>>, %arg4: memref<32x8xf32, #tpu.memory_space<vmem>>) attributes {dimension_semantics = [#tpu.dimension_semantics<parallel>], iteration_bounds = array<i64: 1>, scalar_prefetch = 0 : i64, scratch_operands = 0 : i64, tpu.core_type = #tpu.core_type<tc>, window_params = [{transform_indices = @transform_0, window_bounds = array<i64: 32, 4>}, {pipeline_mode = #tpu.pipeline_mode<synchronous>, transform_indices = @transform_1, window_bounds = array<i64: 4, 8>}, {pipeline_mode = #tpu.pipeline_mode<synchronous>, transform_indices = @transform_2, window_bounds = array<i64: 1, 8>}, {transform_indices = @transform_3, window_bounds = array<i64: 32, 8>}]} {
    %c0 = arith.constant 0 : index
    %c0_0 = arith.constant 0 : index
    %0 = vector.load %arg1[%c0, %c0_0] : memref<32x4xf32, #tpu.memory_space<vmem>>, vector<32x4xf32>
    %c0_1 = arith.constant 0 : index
    %c0_2 = arith.constant 0 : index
    %1 = vector.load %arg2[%c0_1, %c0_2] : memref<4x8xf32, #tpu.memory_space<vmem>>, vector<4x8xf32>
    %cst = arith.constant dense<0.000000e+00> : vector<32x8xf32>
    %2 = tpu.matmul %0, %1, %cst {dimension_numbers = #tpu.dot_dimension_numbers<[1], [0], [0], [1], [0, 0, 1, 1], [], []>} : vector<32x4xf32>, vector<4x8xf32>, vector<32x8xf32> -> vector<32x8xf32>
    %c0_3 = arith.constant 0 : index
    %c0_4 = arith.constant 0 : index
    %3 = vector.load %arg3[%c0_3, %c0_4] : memref<1x8xf32, #tpu.memory_space<vmem>>, vector<1x8xf32>
    %4 = vector.broadcast %3 : vector<1x8xf32> to vector<32x8xf32>
    %5 = arith.addf %2, %4 : vector<32x8xf32>
    %c0_5 = arith.constant 0 : index
    %c0_6 = arith.constant 0 : index
    %6 = vector.load %arg4[%c0_5, %c0_6] : memref<32x8xf32, #tpu.memory_space<vmem>>, vector<32x8xf32>
    tpu.vector_store %arg4[%c0_5, %c0_6], %5 {strides = array<i32>} : memref<32x8xf32, #tpu.memory_space<vmem>>, vector<32x8xf32>,
    return
  }
  func.func @transform_0(%arg0: i32) -> (i32, i32) {
    %c0_i32 = arith.constant 0 : i32
    %c0_i32_0 = arith.constant 0 : i32
    return %arg0, %c0_i32 : i32, i32
  }
  func.func @transform_1(%arg0: i32) -> (i32, i32) {
    %c0_i32 = arith.constant 0 : i32
    %c0_i32_0 = arith.constant 0 : i32
    %c0_i32_1 = arith.constant 0 : i32
    return %c0_i32, %c0_i32_0 : i32, i32
  }
  func.func @transform_2(%arg0: i32) -> (i32, i32) {
    %c0_i32 = arith.constant 0 : i32
    %c0_i32_0 = arith.constant 0 : i32
    %c0_i32_1 = arith.constant 0 : i32
    return %c0_i32, %c0_i32_0 : i32, i32
  }
  func.func @transform_3(%arg0: i32) -> (i32, i32) {
    %c0_i32 = arith.constant 0 : i32
    %c0_i32_0 = arith.constant 0 : i32
    return %arg0, %c0_i32 : i32, i32
  }
}

</mosaic_0001>

<bundles_post_ra>
// kernel: tpu_custom_call.1
= control target key start
LH: loop header
LB: loop body
LE: loop exit
PB: predicated region body
PF: predicated region fallthrough
CT: control target
= control target key end

     0   :  { %vm36_vm0 = vcmask 1043456   ;;  %vm23_vm1 = vcmask 31744   ;;  %vm69_vm2 = vcmask 64512   ;;  %s137_s1 = inlined_call_operand.vmem [shape: f32[4,8], index: 1, kind: input, shape index: {}]   ;;  %s138_s0 = inlined_call_operand.vmem [shape: f32[32,4], index: 0, kind: input, shape index: {}]   ;;  %s139_s2 = inlined_call_operand.vmem [shape: f32[1,8], index: 2, kind: input, shape index: {}]   ;;  %s140_s3 = inlined_call_operand.vmem [shape: f32[32,8], index: 3, kind: output, shape index: {}]  }
   0x1   :  { %v18_v0 = vld [vmem:[%s137_s1] sm:$0xf]  ;;  %v16_v1 = vld [vmem:[%s138_s0 + $0x10] sm:$0xff]  ;;  %v17_v2 = vld [vmem:[%s138_s0 + $0x18] sm:$0xff] }
   0x2   :  { %84 = vmatpush.msk.msra.mxu2 %vm36_vm0, %v18_v0  ;;  %85 = vmatpush.msk.msra.mxu3 %vm36_vm0, %v18_v0  ;;  %v14_v3 = vld [vmem:[%s138_s0] sm:$0xff]  ;;  %v15_v4 = vld [vmem:[%s138_s0 + $0x8] sm:$0xff] }
   0x3   :  { %81 = vmatmul.msk.f32.vlgmr.msra.gmra.mxu2 %vm23_vm1, %v16_v1  ;;  %82 = vmatmul.msk.f32.vlgmr.msra.gmra.mxu3 %vm23_vm1, %v17_v2  ;;  %v86_v5 = vld [vmem:[%s139_s2] ss:$0 sm:$0xff] }
   0x4   :  { %78 = vmatpush.msk.msra.mxu0 %vm36_vm0, %v18_v0  ;;  %83 = vmatpush.msk.msra.mxu1 %vm36_vm0, %v18_v0 }
   0x5   :  { %79 = vmatmul.msk.f32.vlgmr.msra.gmra.mxu0 %vm23_vm1, %v14_v3  ;;  %80 = vmatmul.msk.f32.vlgmr.msra.gmra.mxu1 %vm23_vm1, %v15_v4 }
  0x82   :  { %v57_v6 = vpop.f32.mrf.mxu0  ;;  %v60_v7 = vpop.f32.mrf.mxu1 }
  0x83   :  { %v58_v8 = vadd.f32 %v86_v5, %v57_v6  ;;  %v61_v9 = vadd.f32 %v86_v5, %v60_v7 }
  0x85   :  { %70 = vst.msk [vmem:[%s140_s3] sm:$0xff] %vm69_vm2, %v58_v8 }
  0x86   :  { %71 = vst.msk [vmem:[%s140_s3 + $0x8] sm:$0xff] %vm69_vm2, %v61_v9  ;;  %v63_v10 = vpop.f32.mrf.mxu2  ;;  %v66_v11 = vpop.f32.mrf.mxu3 }
  0x87   :  { %v64_v12 = vadd.f32 %v86_v5, %v63_v10  ;;  %v67_v13 = vadd.f32 %v86_v5, %v66_v11 }
  0x89   :  { %72 = vst.msk [vmem:[%s140_s3 + $0x10] sm:$0xff] %vm69_vm2, %v64_v12 }
  0x8a   :  { %73 = vst.msk [vmem:[%s140_s3 + $0x18] sm:$0xff] %vm69_vm2, %v67_v13 }

</bundles_post_ra>
